<compile_context>
chip_gen: v6e
topology: v6e:2x2x1
jax: 0.10.0
libtpu: 0.0.40
codegen_flags: <defaults>
</compile_context>

<pallas_src>
import jax
import jax.numpy as jnp
from jax.experimental import pallas as pl
from jax.experimental.pallas import tpu as pltpu

INPUT_SIZE = 4
HIDDEN_SIZE = 20
NUM_CLASSES = 3
BN_EPS = 1e-5

# (TILE_B, 4)/(TILE_B, 20) activations pad to 128 lanes in VMEM, i.e. each live
# buffer is TILE_B*128*4 bytes.  1024 keeps the double-buffered working set far
# below the scoped VMEM limit on every generation (incl. v7x's 64 MiB) while
# still giving the pipeline multiple grid steps at realistic batch sizes.
TILE_B_MAX = 1024


def _round_up(n, m):
    return ((n + m - 1) // m) * m


def mlp_kernel(x_ref, w1_ref, w2_ref, w3_ref, bias_ref, o_ref):
    """One batch tile: Linear->ReLU->Linear->ReLU->(BN folded into W3/b3)->Linear->Softmax."""
    x = x_ref[...]
    b1 = bias_ref[0:1, :]                 # (1, HIDDEN_SIZE)
    b2 = bias_ref[1:2, :]                 # (1, HIDDEN_SIZE)
    b3 = bias_ref[2:3, :NUM_CLASSES]      # (1, NUM_CLASSES)

    # inLayer + ReLU
    h = jnp.dot(x, w1_ref[...], preferred_element_type=jnp.float32) + b1
    h = jnp.maximum(h, 0.0)

    # hidden block: Linear -> ReLU.  Eval-mode BatchNorm1d (running stats) has
    # been folded into w3/b3 in the wrapper; Dropout(0.3) is identity in eval.
    # TODO(synk): training-mode stochastic dropout is not implemented here.
    h = jnp.dot(h, w2_ref[...], preferred_element_type=jnp.float32) + b2
    h = jnp.maximum(h, 0.0)

    # outLayer (BN-folded) + Softmax(dim=1)
    logits = jnp.dot(h, w3_ref[...], preferred_element_type=jnp.float32) + b3
    m = jnp.max(logits, axis=1, keepdims=True)
    e = jnp.exp(logits - m)
    denom = jnp.sum(e, axis=1, keepdims=True)
    # EUP reciprocal keeps the divide off the VPU path.
    o_ref[...] = e * pl.reciprocal(denom, approx=True)


def init_params(key):
    """Deterministic params mimicking PyTorch nn.Linear default init (U[-k,k], k=1/sqrt(fan_in)).

    BatchNorm params / running stats are made non-trivial so the BN->Linear fold
    is actually exercised by the correctness check below.
    """
    ks = jax.random.split(key, 10)

    def linear(kw, kb, fan_in, fan_out):
        bound = 1.0 / jnp.sqrt(jnp.float32(fan_in))
        w = jax.random.uniform(kw, (fan_in, fan_out), jnp.float32, -bound, bound)
        b = jax.random.uniform(kb, (1, fan_out), jnp.float32, -bound, bound)
        return w, b

    w1, b1 = linear(ks[0], ks[1], INPUT_SIZE, HIDDEN_SIZE)
    w2, b2 = linear(ks[2], ks[3], HIDDEN_SIZE, HIDDEN_SIZE)
    w3, b3 = linear(ks[4], ks[5], HIDDEN_SIZE, NUM_CLASSES)

    gamma = jax.random.uniform(ks[6], (1, HIDDEN_SIZE), jnp.float32, 0.5, 1.5)
    beta = jax.random.uniform(ks[7], (1, HIDDEN_SIZE), jnp.float32, -0.5, 0.5)
    mean = jax.random.uniform(ks[8], (1, HIDDEN_SIZE), jnp.float32, -0.5, 0.5)
    var = jax.random.uniform(ks[9], (1, HIDDEN_SIZE), jnp.float32, 0.5, 1.5)

    return dict(w1=w1, b1=b1, w2=w2, b2=b2,
                gamma=gamma, beta=beta, mean=mean, var=var,
                w3=w3, b3=b3)


def prepare_kernel_params(params):
    """Fold eval-mode BatchNorm1d into the output linear and pack the small biases.

    BN(h) = h*s + t with s = gamma*rsqrt(var+eps), t = beta - mean*s, so
    BN(h) @ W3 + b3 == h @ (s[:,None]*W3) + (t @ W3 + b3).
    """
    s = params["gamma"] * jax.lax.rsqrt(params["var"] + BN_EPS)   # (1, H)
    t = params["beta"] - params["mean"] * s                       # (1, H)
    w3_folded = s.reshape(HIDDEN_SIZE, 1) * params["w3"]          # (H, C)
    b3_folded = params["b3"] + t @ params["w3"]                   # (1, C)

    bias_pack = jnp.zeros((3, HIDDEN_SIZE), jnp.float32)
    bias_pack = bias_pack.at[0, :].set(params["b1"][0])
    bias_pack = bias_pack.at[1, :].set(params["b2"][0])
    bias_pack = bias_pack.at[2, :NUM_CLASSES].set(b3_folded[0])
    return params["w1"], params["w2"], w3_folded, bias_pack


def neural_net_forward(x, params):
    w1, w2, w3f, bias_pack = prepare_kernel_params(params)

    batch = x.shape[0]
    tile_b = min(TILE_B_MAX, _round_up(batch, 8))
    padded = _round_up(batch, tile_b)
    if padded != batch:
        x = jnp.pad(x, ((0, padded - batch), (0, 0)))
    grid = (padded // tile_b,)

    out = pl.pallas_call(
        mlp_kernel,
        out_shape=jax.ShapeDtypeStruct((padded, NUM_CLASSES), jnp.float32),
        grid=grid,
        in_specs=[
            # x: tiled over batch
            pl.BlockSpec((tile_b, INPUT_SIZE), lambda i: (i, 0)),
            # weights / packed biases: resident in VMEM across all grid steps
            pl.BlockSpec((INPUT_SIZE, HIDDEN_SIZE), lambda i: (0, 0)),
            pl.BlockSpec((HIDDEN_SIZE, HIDDEN_SIZE), lambda i: (0, 0)),
            pl.BlockSpec((HIDDEN_SIZE, NUM_CLASSES), lambda i: (0, 0)),
            pl.BlockSpec((3, HIDDEN_SIZE), lambda i: (0, 0)),
        ],
        out_specs=pl.BlockSpec((tile_b, NUM_CLASSES), lambda i: (i, 0)),
        compiler_params=pltpu.CompilerParams(
            dimension_semantics=("parallel",)),
    )(x, w1, w2, w3f, bias_pack)
    return out[:batch]


def reference_forward(x, params):
    """Pure-JAX reference of the unfused module (eval mode) for validation."""
    h = jnp.maximum(x @ params["w1"] + params["b1"], 0.0)
    h = jnp.maximum(h @ params["w2"] + params["b2"], 0.0)
    inv_std = jax.lax.rsqrt(params["var"] + BN_EPS)
    h = (h - params["mean"]) * inv_std * params["gamma"] + params["beta"]
    logits = h @ params["w3"] + params["b3"]
    return jax.nn.softmax(logits, axis=1)


if __name__ == "__main__":
    key = jax.random.PRNGKey(0)
    k_params, k_x = jax.random.split(key)
    params = init_params(k_params)

    batch = 8
    # StandardScaler-like input: roughly zero-mean unit-variance features
    x = jax.random.normal(k_x, (batch, INPUT_SIZE), jnp.float32)

    out = neural_net_forward(x, params)
    out = jax.block_until_ready(out)

    assert out.shape == (batch, NUM_CLASSES)
    ref = reference_forward(x, params)
    # Loose tolerance covers the approx EUP reciprocal in the softmax.
    assert jnp.allclose(out, ref, atol=2e-3, rtol=0), "mismatch vs reference"
    print("KERNEL_OK")
</pallas_src>

<mosaic_0001>
module attributes {stable_mosaic.version = 11 : i64} {
  func.func @mlp_kernel(%arg0: i32, %arg1: memref<8x4xf32, #tpu.memory_space<vmem>>, %arg2: memref<4x20xf32, #tpu.memory_space<vmem>>, %arg3: memref<20x20xf32, #tpu.memory_space<vmem>>, %arg4: memref<20x3xf32, #tpu.memory_space<vmem>>, %arg5: memref<3x20xf32, #tpu.memory_space<vmem>>, %arg6: memref<8x3xf32, #tpu.memory_space<vmem>>) attributes {dimension_semantics = [#tpu.dimension_semantics<parallel>], iteration_bounds = array<i64: 1>, scalar_prefetch = 0 : i64, scratch_operands = 0 : i64, tpu.core_type = #tpu.core_type<tc>, window_params = [{transform_indices = @transform_0, window_bounds = array<i64: 8, 4>}, {pipeline_mode = #tpu.pipeline_mode<synchronous>, transform_indices = @transform_1, window_bounds = array<i64: 4, 20>}, {pipeline_mode = #tpu.pipeline_mode<synchronous>, transform_indices = @transform_2, window_bounds = array<i64: 20, 20>}, {pipeline_mode = #tpu.pipeline_mode<synchronous>, transform_indices = @transform_3, window_bounds = array<i64: 20, 3>}, {pipeline_mode = #tpu.pipeline_mode<synchronous>, transform_indices = @transform_4, window_bounds = array<i64: 3, 20>}, {transform_indices = @transform_5, window_bounds = array<i64: 8, 3>}]} {
    %c0 = arith.constant 0 : index
    %c0_0 = arith.constant 0 : index
    %0 = vector.load %arg1[%c0, %c0_0] : memref<8x4xf32, #tpu.memory_space<vmem>>, vector<8x4xf32>
    %c0_1 = arith.constant 0 : index
    %c0_2 = arith.constant 0 : index
    %1 = vector.load %arg5[%c0_1, %c0_2] : memref<3x20xf32, #tpu.memory_space<vmem>>, vector<1x20xf32>
    %c1 = arith.constant 1 : index
    %c0_3 = arith.constant 0 : index
    %2 = vector.load %arg5[%c1, %c0_3] : memref<3x20xf32, #tpu.memory_space<vmem>>, vector<1x20xf32>
    %c2 = arith.constant 2 : index
    %c0_4 = arith.constant 0 : index
    %3 = vector.load %arg5[%c2, %c0_4] : memref<3x20xf32, #tpu.memory_space<vmem>>, vector<1x3xf32>
    %c0_5 = arith.constant 0 : index
    %c0_6 = arith.constant 0 : index
    %4 = vector.load %arg2[%c0_5, %c0_6] : memref<4x20xf32, #tpu.memory_space<vmem>>, vector<4x20xf32>
    %cst = arith.constant dense<0.000000e+00> : vector<8x20xf32>
    %5 = tpu.matmul %0, %4, %cst {dimension_numbers = #tpu.dot_dimension_numbers<[1], [0], [0], [1], [0, 0, 1, 1], [], []>} : vector<8x4xf32>, vector<4x20xf32>, vector<8x20xf32> -> vector<8x20xf32>
    %6 = vector.broadcast %1 : vector<1x20xf32> to vector<8x20xf32>
    %7 = arith.addf %5, %6 : vector<8x20xf32>
    %cst_7 = arith.constant 0.000000e+00 : f32
    %8 = vector.broadcast %cst_7 : f32 to vector<8x20xf32>
    %9 = arith.maximumf %7, %8 : vector<8x20xf32>
    %c0_8 = arith.constant 0 : index
    %c0_9 = arith.constant 0 : index
    %10 = vector.load %arg3[%c0_8, %c0_9] : memref<20x20xf32, #tpu.memory_space<vmem>>, vector<20x20xf32>
    %cst_10 = arith.constant dense<0.000000e+00> : vector<8x20xf32>
    %11 = tpu.matmul %9, %10, %cst_10 {dimension_numbers = #tpu.dot_dimension_numbers<[1], [0], [0], [1], [0, 0, 1, 1], [], []>} : vector<8x20xf32>, vector<20x20xf32>, vector<8x20xf32> -> vector<8x20xf32>
    %12 = vector.broadcast %2 : vector<1x20xf32> to vector<8x20xf32>
    %13 = arith.addf %11, %12 : vector<8x20xf32>
    %cst_11 = arith.constant 0.000000e+00 : f32
    %14 = vector.broadcast %cst_11 : f32 to vector<8x20xf32>
    %15 = arith.maximumf %13, %14 : vector<8x20xf32>
    %c0_12 = arith.constant 0 : index
    %c0_13 = arith.constant 0 : index
    %16 = vector.load %arg4[%c0_12, %c0_13] : memref<20x3xf32, #tpu.memory_space<vmem>>, vector<20x3xf32>
    %cst_14 = arith.constant dense<0.000000e+00> : vector<8x3xf32>
    %17 = tpu.matmul %15, %16, %cst_14 {dimension_numbers = #tpu.dot_dimension_numbers<[1], [0], [0], [1], [0, 0, 1, 1], [], []>} : vector<8x20xf32>, vector<20x3xf32>, vector<8x3xf32> -> vector<8x3xf32>
    %18 = vector.broadcast %3 : vector<1x3xf32> to vector<8x3xf32>
    %19 = arith.addf %17, %18 : vector<8x3xf32>
    %cst_15 = arith.constant dense<0xFF800000> : vector<8xf32>
    %20 = vector.multi_reduction <maximumf>, %19, %cst_15 [1] : vector<8x3xf32> to vector<8xf32>
    %21 = vector.shape_cast %20 : vector<8xf32> to vector<8x1xf32>
    %22 = vector.broadcast %21 : vector<8x1xf32> to vector<8x3xf32>
    %23 = arith.subf %19, %22 : vector<8x3xf32>
    %24 = math.exp %23 : vector<8x3xf32>
    %cst_16 = arith.constant dense<0.000000e+00> : vector<8xf32>
    %25 = vector.multi_reduction <add>, %24, %cst_16 [1] : vector<8x3xf32> to vector<8xf32>
    %26 = vector.shape_cast %25 : vector<8xf32> to vector<8x1xf32>
    %27 = tpu.reciprocal %26 {approx = true} : vector<8x1xf32> -> vector<8x1xf32>
    %28 = vector.broadcast %27 : vector<8x1xf32> to vector<8x3xf32>
    %29 = arith.mulf %24, %28 : vector<8x3xf32>
    %c0_17 = arith.constant 0 : index
    %c0_18 = arith.constant 0 : index
    %30 = vector.load %arg6[%c0_17, %c0_18] : memref<8x3xf32, #tpu.memory_space<vmem>>, vector<8x3xf32>
    tpu.vector_store %arg6[%c0_17, %c0_18], %29 {strides = array<i32>} : memref<8x3xf32, #tpu.memory_space<vmem>>, vector<8x3xf32>,
    return
  }
  func.func @transform_0(%arg0: i32) -> (i32, i32) {
    %c0_i32 = arith.constant 0 : i32
    %c0_i32_0 = arith.constant 0 : i32
    return %arg0, %c0_i32 : i32, i32
  }
  func.func @transform_1(%arg0: i32) -> (i32, i32) {
    %c0_i32 = arith.constant 0 : i32
    %c0_i32_0 = arith.constant 0 : i32
    %c0_i32_1 = arith.constant 0 : i32
    return %c0_i32, %c0_i32_0 : i32, i32
  }
  func.func @transform_2(%arg0: i32) -> (i32, i32) {
    %c0_i32 = arith.constant 0 : i32
    %c0_i32_0 = arith.constant 0 : i32
    %c0_i32_1 = arith.constant 0 : i32
    return %c0_i32, %c0_i32_0 : i32, i32
  }
  func.func @transform_3(%arg0: i32) -> (i32, i32) {
    %c0_i32 = arith.constant 0 : i32
    %c0_i32_0 = arith.constant 0 : i32
    %c0_i32_1 = arith.constant 0 : i32
    return %c0_i32, %c0_i32_0 : i32, i32
  }
  func.func @transform_4(%arg0: i32) -> (i32, i32) {
    %c0_i32 = arith.constant 0 : i32
    %c0_i32_0 = arith.constant 0 : i32
    %c0_i32_1 = arith.constant 0 : i32
    return %c0_i32, %c0_i32_0 : i32, i32
  }
  func.func @transform_5(%arg0: i32) -> (i32, i32) {
    %c0_i32 = arith.constant 0 : i32
    %c0_i32_0 = arith.constant 0 : i32
    return %arg0, %c0_i32 : i32, i32
  }
}

</mosaic_0001>

<bundles_post_ra>
// kernel: tpu_custom_call.1
= control target key start
LH: loop header
LB: loop body
LE: loop exit
PB: predicated region body
PF: predicated region fallthrough
CT: control target
= control target key end

     0   :  { %vm33_vm0 = vcmask 1043456   ;;  %vm29_vm1 = vcmask 31744   ;;  %v341_v0 = vmov 0.0   ;;  %vm342_vm2 = vmmov 0   ;;  %s417_s1 = inlined_call_operand.vmem [shape: f32[4,20], index: 1, kind: input, shape index: {}]   ;;  %s418_s0 = inlined_call_operand.vmem [shape: f32[8,4], index: 0, kind: input, shape index: {}]   ;;  %s419_s2 = inlined_call_operand.vmem [shape: f32[20,20], index: 2, kind: input, shape index: {}]   ;;  %s420_s4 = inlined_call_operand.vmem [shape: f32[3,20], index: 4, kind: input, shape index: {}]   ;;  %s421_s3 = inlined_call_operand.vmem [shape: f32[20,3], index: 3, kind: input, shape index: {}]   ;;  %s422_s5 = inlined_call_operand.vmem [shape: f32[8,3], index: 5, kind: output, shape index: {}]  }
   0x1   :  { %312 = vmatprep.subr.mxu0 %v341_v0  ;;  %v24_v1 = vld [vmem:[%s417_s1] sm:$0xf]  ;;  %314 = vmatprep.mubr.msk.f32.mxu0 %vm342_vm2, %v341_v0  ;;  %v110_v3 = vld [vmem:[%s419_s2 + $0x10] sm:$0xf]  ;;  %v109_v4 = vld [vmem:[%s419_s2 + $0x8] sm:$0xff]  ;;  %vm115_vm3 = vcmask 162816  }
   0x2   :  { %v20_v2 = vld [vmem:[%s418_s0] sm:$0xff]  ;;  %313 = vmatpush3.msk.msra.mxu0 %vm33_vm0, %v24_v1  ;;  %317 = vmatprep.subr.mxu1 %v341_v0  ;;  %v195_v11 = vld [vmem:[%s421_s3 + $0x10] sm:$0xf]  ;;  %v194_v12 = vld [vmem:[%s421_s3 + $0x8] sm:$0xff]  ;;  %vm276_vm4 = vcmask 23552  }
   0x3   :  { %315 = vmatmul.mubr.msk.f32.vlgmr.msra.gmra.mxu0 %vm29_vm1, %v20_v2  ;;  %323 = vmatprep.mubr.msk.f32.mxu1 %vm342_vm2, %v341_v0  ;;  %v108_v5 = vld [vmem:[%s419_s2] sm:$0xff] }
   0x4   :  { %326 = vmatprep.subr.mxu0 %v341_v0  ;;  %332 = vmatprep.mubr.msk.f32.mxu0 %vm342_vm2, %v341_v0  ;;  %v293_v6 = vld [vmem:[%s420_s4] ss:$0 sm:$0xff]  ;;  %v296_v14 = vld [vmem:[%s420_s4 + $0x1] ss:$0 sm:$0xff]  ;;  %v299_v19 = vld [vmem:[%s420_s4 + $0x2] ss:$0 sm:$0xff] }
   0x5   :  { %318 = vmatpush3.msk.msra.mxu1 %vm33_vm0, %v110_v3  ;;  %327 = vmatpush3.msk.msra.mxu0 %vm33_vm0, %v195_v11  ;;  %v193_v13 = vld [vmem:[%s421_s3] sm:$0xff] }
   0x6   :  { %319 = vmatprep.subr.mxu1 %v341_v0  ;;  %328 = vmatprep.subr.mxu0 %v341_v0 }
   0x7   :  { %320 = vmatpush3.msra.mxu1 %v109_v4  ;;  %329 = vmatpush3.msra.mxu0 %v194_v12 }
   0x8   :  { %321 = vmatprep.subr.mxu1 %v341_v0  ;;  %330 = vmatprep.subr.mxu0 %v341_v0 }
   0x9   :  { %322 = vmatpush3.msra.mxu1 %v108_v5  ;;  %331 = vmatpush3.msra.mxu0 %v193_v13 }
  0xc3   :  { %v103_v7 = vpop.f32.mrf.mxu0 }
  0xc4   :  { %v104_v8 = vadd.f32 %v293_v6, %v103_v7 }
  0xc5   :  { %v316_v9 = vpop.f32.mrf.mxu0 }
  0xc6   :  { %v107_v10 = vmax.f32 %v104_v8, 0.0 }
  0xc8   :  { %324 = vmatmul.mubr.msk.f32.vlgmr.msra.gmra.mxu1 %vm115_vm3, %v107_v10 }
 0x188   :  { %v188_v15 = vpop.f32.mrf.mxu1 }
 0x189   :  { %v189_v16 = vadd.f32 %v296_v14, %v188_v15 }
 0x18a   :  { %v325_v17 = vpop.f32.mrf.mxu1 }
 0x18b   :  { %v192_v18 = vmax.f32 %v189_v16, 0.0 }
 0x18d   :  { %333 = vmatmul.mubr.msk.f32.vlgmr.msra.gmra.mxu0 %vm115_vm3, %v192_v18 }
 0x24d   :  { %v272_v20 = vpop.f32.mrf.mxu0 }
 0x24e   :  { %v273_v21 = vadd.f32 %v299_v19, %v272_v20 }
 0x24f   :  { %v334_v22 = vpop.f32.mrf.mxu0 }
 0x250   :  { %v277_v23 = vsel %vm276_vm4, %v273_v21, -inf }
 0x251   :  { %278 = vmax.xlane.f32.xlu0 %v277_v23 }
 0x2da   :  { %v279_v24 = vpop.xlane.xlu0 %278 }
 0x2db   :  { %v280_v25 = vsub.f32 %v273_v21, %v279_v24 }
 0x2dd   :  { %v281_v26 = vmul.f32 1.442695, %v280_v25 }
 0x2df   :  { %337 = vpow2.f32 %v281_v26 }
 0x2ec   :  { %v338_v27 = vpop.eup %337 }
 0x2ed   :  { %v283_v28 = vsel %vm276_vm4, %v338_v27, 0.0 }
 0x2ee   :  { %284 = vadd.xlane.f32.xlu0 %v283_v28 }
 0x377   :  { %v285_v29 = vpop.xlane.xlu0 %284 }
 0x378   :  { %339 = vrcp.f32 %v285_v29 }
 0x385   :  { %v340_v30 = vpop.eup %339 }
 0x386   :  { %v287_v31 = vmul.f32 %v340_v30, %v338_v27 }
 0x388   :  { %288 = vst.msk [vmem:[%s422_s5] sm:$0xff] %vm276_vm4, %v287_v31 }

</bundles_post_ra>
